<compile_context>
chip_gen: v6e
topology: v6e:2x2x1
jax: 0.10.0
libtpu: 0.0.40
codegen_flags: <defaults>
</compile_context>

<pallas_src>
import functools

import jax
import jax.numpy as jnp
from jax.experimental import pallas as pl
from jax.experimental.pallas import tpu as pltpu


def _pick_tile(n, target, mult):
    """Largest t <= target with t % mult == 0 and n % t == 0; else n (full dim)."""
    if n <= target:
        return n
    t = (target // mult) * mult
    while t >= mult:
        if n % t == 0:
            return t
        t -= mult
    # Falls back to the full dimension (no tiling). Fine for the shapes used
    # here; pad upstream for huge prime-ish dims.
    return n


# ---------------------------------------------------------------------------
# Kernel 1: fused QKV projection -> head-major bf16
# ---------------------------------------------------------------------------
def _qkv_proj_kernel(q_ref, k_ref, v_ref, w_ref, b_ref,
                     qo_ref, ko_ref, vo_ref, *, num_heads):
    # q/k/v_ref: (1, Ts, D) f32 row tiles (one batch element).
    # w_ref:     (3, D, D) bf16, pre-transposed; 1/sqrt(Dh) folded into w[0].
    # b_ref:     (3, 1, D) f32; 1/sqrt(Dh) folded into b[0].
    # qo/ko/vo:  (H, Ts, Dh) bf16 head-major output tiles.
    Ts, D = q_ref.shape[1], q_ref.shape[2]
    H = num_heads
    Dh = D // H

    def project(x_ref, i):
        x = x_ref[0].astype(jnp.bfloat16)
        y = jnp.dot(x, w_ref[i], preferred_element_type=jnp.float32) + b_ref[i]
        # One head-split relayout per row tile (hidden behind the MXU work),
        # so the flash kernel never relayouts inside its kv loop.
        return y.reshape(Ts, H, Dh).transpose(1, 0, 2).astype(jnp.bfloat16)

    qo_ref[...] = project(q_ref, 0)
    ko_ref[...] = project(k_ref, 1)
    vo_ref[...] = project(v_ref, 2)


# ---------------------------------------------------------------------------
# Kernel 2: flash-style attention (per head), online softmax
# ---------------------------------------------------------------------------
def _flash_attn_kernel(*refs, has_mask):
    if has_mask:
        q_ref, k_ref, v_ref, mask_ref, o_ref, m_sc, l_sc, acc_sc = refs
    else:
        q_ref, k_ref, v_ref, o_ref, m_sc, l_sc, acc_sc = refs
        mask_ref = None

    ki = pl.program_id(2)

    @pl.when(ki == 0)
    def _():
        m_sc[...] = jnp.full(m_sc.shape, -jnp.inf, dtype=jnp.float32)
        l_sc[...] = jnp.zeros(l_sc.shape, dtype=jnp.float32)
        acc_sc[...] = jnp.zeros(acc_sc.shape, dtype=jnp.float32)

    q = q_ref[0]                       # (Tq, Dh) bf16, already scaled
    k = k_ref[0]                       # (Tk, Dh) bf16
    v = v_ref[0]                       # (Tk, Dh) bf16

    # Scores: contraction over Dh on the MXU, f32 accumulation.
    s = jax.lax.dot_general(q, k, (((1,), (1,)), ((), ())),
                            preferred_element_type=jnp.float32)   # (Tq, Tk)

    if has_mask:
        # torch.masked_fill(mask == 0, 1e-16); (Tq, Tk) compare, no head bcast.
        s = jnp.where(mask_ref[0] == 0, jnp.float32(1e-16), s)

    # Online softmax update (f32 running stats).
    m_prev = m_sc[...]                                            # (Tq, 1)
    m_new = jnp.maximum(m_prev, jnp.max(s, axis=-1, keepdims=True))
    alpha = jnp.exp(m_prev - m_new)
    p = jnp.exp(s - m_new)                                        # (Tq, Tk) f32
    l_sc[...] = alpha * l_sc[...] + jnp.sum(p, axis=-1, keepdims=True)
    acc_sc[...] = alpha * acc_sc[...] + jnp.dot(
        p.astype(jnp.bfloat16), v, preferred_element_type=jnp.float32)
    m_sc[...] = m_new

    @pl.when(ki == pl.num_programs(2) - 1)
    def _():
        inv_l = pl.reciprocal(l_sc[...], approx=True)             # EUP slot
        o_ref[0] = (acc_sc[...] * inv_l).astype(o_ref.dtype)


# ---------------------------------------------------------------------------
# Wrapper
# ---------------------------------------------------------------------------
def multi_head_attention(q, k, v, params, mask=None, *, num_heads):
    """q, k, v: [B, S, D] float32.  mask: optional [S, S] or [B, S, S] (0 = masked)."""
    B, S, D = q.shape
    assert D % num_heads == 0
    H = num_heads
    Dh = D // H
    wq, bq, wk, bk, wv, bv = params
    scale = 1.0 / float(Dh) ** 0.5

    # Stacked, pre-transposed projection weights; 1/sqrt(Dh) folded into the
    # q slice so neither kernel does a per-tile rescale.
    w_all = jnp.stack([wq.T * scale, wk.T, wv.T], axis=0).astype(jnp.bfloat16)
    b_all = jnp.stack([bq * scale, bk, bv], axis=0).reshape(3, 1, D).astype(jnp.float32)

    # ---- Kernel 1: fused QKV projection -> head-major bf16 -----------------
    Ts = _pick_tile(S, 256, 8)
    x_spec = pl.BlockSpec((1, Ts, D), lambda b, si: (b, si, 0))
    hm_spec = pl.BlockSpec((H, Ts, Dh), lambda b, si: (b, si, 0))
    hm_shape = jax.ShapeDtypeStruct((B * H, S, Dh), jnp.bfloat16)

    qh, kh, vh = pl.pallas_call(
        functools.partial(_qkv_proj_kernel, num_heads=H),
        out_shape=(hm_shape, hm_shape, hm_shape),
        grid_spec=pltpu.PrefetchScalarGridSpec(
            num_scalar_prefetch=0,
            grid=(B, S // Ts),
            in_specs=[x_spec, x_spec, x_spec,
                      pl.BlockSpec((3, D, D), lambda b, si: (0, 0, 0)),
                      pl.BlockSpec((3, 1, D), lambda b, si: (0, 0, 0))],
            out_specs=[hm_spec, hm_spec, hm_spec],
        ),
        compiler_params=pltpu.CompilerParams(
            dimension_semantics=("parallel", "parallel"),
            vmem_limit_bytes=48 * 1024 * 1024),
        cost_estimate=pl.CostEstimate(
            flops=2 * 3 * B * S * D * D,
            transcendentals=0,
            bytes_accessed=3 * B * S * D * 4 + 3 * B * S * D * 2 + 3 * D * D * 2),
    )(q, k, v, w_all, b_all)

    # ---- Kernel 2: flash attention over head-major tiles -------------------
    Tq = _pick_tile(S, 256, 8)
    Tk = _pick_tile(S, 1024, 128)

    q_spec = pl.BlockSpec((1, Tq, Dh), lambda bh, qi, ki: (bh, qi, 0))
    kv_spec = pl.BlockSpec((1, Tk, Dh), lambda bh, qi, ki: (bh, ki, 0))
    o_spec = pl.BlockSpec((1, Tq, Dh), lambda bh, qi, ki: (bh, qi, 0))

    in_specs = [q_spec, kv_spec, kv_spec]
    args = [qh, kh, vh]
    has_mask = mask is not None
    mask_bytes = 0
    if has_mask:
        m = jnp.asarray(mask)
        if m.ndim == 2:
            # Batch-shared mask: stream it un-replicated (constant batch index).
            mask8 = (m != 0).astype(jnp.int8).reshape(1, S, S)
            in_specs.append(pl.BlockSpec((1, Tq, Tk),
                                         lambda bh, qi, ki: (0, qi, ki)))
            mask_bytes = S * S
        else:
            mask8 = (m != 0).astype(jnp.int8)
            in_specs.append(pl.BlockSpec((1, Tq, Tk),
                                         lambda bh, qi, ki: (bh // H, qi, ki)))
            mask_bytes = B * S * S
        args.append(mask8)

    ctx = pl.pallas_call(
        functools.partial(_flash_attn_kernel, has_mask=has_mask),
        out_shape=jax.ShapeDtypeStruct((B * H, S, Dh), jnp.float32),
        grid_spec=pltpu.PrefetchScalarGridSpec(
            num_scalar_prefetch=0,
            grid=(B * H, S // Tq, S // Tk),
            in_specs=in_specs,
            out_specs=o_spec,
            scratch_shapes=[pltpu.VMEM((Tq, 1), jnp.float32),
                            pltpu.VMEM((Tq, 1), jnp.float32),
                            pltpu.VMEM((Tq, Dh), jnp.float32)]),
        compiler_params=pltpu.CompilerParams(
            dimension_semantics=("parallel", "parallel", "arbitrary"),
            vmem_limit_bytes=32 * 1024 * 1024),
        cost_estimate=pl.CostEstimate(
            flops=4 * B * S * S * D,
            transcendentals=B * H * S * S,
            bytes_accessed=(B * S * D * 2) * (1 + 2 * (S // Tq))
                           + B * S * D * 4 + mask_bytes),
    )(*args)

    # Merge heads: (B*H, S, Dh) -> (B, S, D).
    # TODO(synk): dropout is identity (eval-mode); PyTorch training-mode dropout
    # is stochastic and not reproduced.
    return ctx.reshape(B, H, S, Dh).transpose(0, 2, 1, 3).reshape(B, S, D)


def _reference(q, k, v, params, mask, num_heads):
    """Pure-JAX f32 reference mirroring the PyTorch forward (dropout = identity)."""
    B, S, D = q.shape
    Dh = D // num_heads
    wq, bq, wk, bk, wv, bv = params
    qp = q @ wq.T + bq
    kp = k @ wk.T + bk
    vp = v @ wv.T + bv

    def split(x):
        return x.reshape(B, S, num_heads, Dh).transpose(0, 2, 1, 3)

    qh, kh, vh = split(qp), split(kp), split(vp)
    score = jnp.einsum('bhqd,bhkd->bhqk', qh, kh) / jnp.sqrt(jnp.float32(Dh))
    if mask is not None:
        m = mask if mask.ndim == 3 else mask[None]
        score = jnp.where(m[:, None, :, :] == 0, 1e-16, score)
    attn = jax.nn.softmax(score, axis=-1)
    ctx = jnp.einsum('bhqk,bhkd->bhqd', attn, vh)
    return ctx.transpose(0, 2, 1, 3).reshape(B, S, D)


if __name__ == "__main__":
    # Small shapes consistent with the module.
    B, S, D, H = 2, 8, 32, 4

    key = jax.random.PRNGKey(0)
    (k_q, k_k, k_v, k_wq, k_bq, k_wk, k_bk, k_wv, k_bv) = jax.random.split(key, 9)

    q = jax.random.normal(k_q, (B, S, D), dtype=jnp.float32)
    k = jax.random.normal(k_k, (B, S, D), dtype=jnp.float32)
    v = jax.random.normal(k_v, (B, S, D), dtype=jnp.float32)

    # torch.nn.Linear-shaped params: W (D, D), b (D,).
    wscale = 1.0 / jnp.sqrt(jnp.float32(D))
    params = (
        jax.random.uniform(k_wq, (D, D), jnp.float32, -wscale, wscale),
        jax.random.uniform(k_bq, (D,), jnp.float32, -wscale, wscale),
        jax.random.uniform(k_wk, (D, D), jnp.float32, -wscale, wscale),
        jax.random.uniform(k_bk, (D,), jnp.float32, -wscale, wscale),
        jax.random.uniform(k_wv, (D, D), jnp.float32, -wscale, wscale),
        jax.random.uniform(k_bv, (D,), jnp.float32, -wscale, wscale),
    )

    # Batch-shared causal mask (1 = keep, 0 = masked), passed as (S, S) so the
    # kernel does not stream a batch-replicated mask.
    mask2d = jnp.tril(jnp.ones((S, S), jnp.int32))

    out = multi_head_attention(q, k, v, params, mask=mask2d, num_heads=H)
    out = jax.block_until_ready(out)
    ref = _reference(q, k, v, params, mask2d, H)
    assert out.shape == (B, S, D)
    # bf16 MXU operands + approx reciprocal => looser tolerance vs f32 reference.
    assert jnp.allclose(out, ref, atol=5e-2, rtol=5e-2), "mismatch vs reference (masked)"

    # Also exercise the specialized no-mask path.
    out_nm = multi_head_attention(q, k, v, params, mask=None, num_heads=H)
    out_nm = jax.block_until_ready(out_nm)
    ref_nm = _reference(q, k, v, params, None, H)
    assert jnp.allclose(out_nm, ref_nm, atol=5e-2, rtol=5e-2), "mismatch vs reference (no mask)"

    print("KERNEL_OK")
</pallas_src>

<mosaic_0001>
module attributes {stable_mosaic.version = 11 : i64} {
  func.func @_qkv_proj_kernel(%arg0: i32, %arg1: i32, %arg2: memref<1x8x32xf32, #tpu.memory_space<vmem>>, %arg3: memref<1x8x32xf32, #tpu.memory_space<vmem>>, %arg4: memref<1x8x32xf32, #tpu.memory_space<vmem>>, %arg5: memref<3x32x32xbf16, #tpu.memory_space<vmem>>, %arg6: memref<3x1x32xf32, #tpu.memory_space<vmem>>, %arg7: memref<4x8x8xbf16, #tpu.memory_space<vmem>>, %arg8: memref<4x8x8xbf16, #tpu.memory_space<vmem>>, %arg9: memref<4x8x8xbf16, #tpu.memory_space<vmem>>) attributes {dimension_semantics = [#tpu.dimension_semantics<parallel>, #tpu.dimension_semantics<parallel>], iteration_bounds = array<i64: 2, 1>, scalar_prefetch = 0 : i64, scratch_operands = 0 : i64, tpu.core_type = #tpu.core_type<tc>, window_params = [{transform_indices = @transform_0, window_bounds = array<i64: 1, 8, 32>}, {transform_indices = @transform_1, window_bounds = array<i64: 1, 8, 32>}, {transform_indices = @transform_2, window_bounds = array<i64: 1, 8, 32>}, {pipeline_mode = #tpu.pipeline_mode<synchronous>, transform_indices = @transform_3, window_bounds = array<i64: 3, 32, 32>}, {pipeline_mode = #tpu.pipeline_mode<synchronous>, transform_indices = @transform_4, window_bounds = array<i64: 3, 1, 32>}, {transform_indices = @transform_5, window_bounds = array<i64: 4, 8, 8>}, {transform_indices = @transform_6, window_bounds = array<i64: 4, 8, 8>}, {transform_indices = @transform_7, window_bounds = array<i64: 4, 8, 8>}]} {
    %c0 = arith.constant 0 : index
    %c0_0 = arith.constant 0 : index
    %c0_1 = arith.constant 0 : index
    %0 = vector.load %arg2[%c0, %c0_0, %c0_1] : memref<1x8x32xf32, #tpu.memory_space<vmem>>, vector<1x8x32xf32>
    %1 = vector.shape_cast %0 : vector<1x8x32xf32> to vector<8x32xf32>
    %2 = arith.truncf %1 : vector<8x32xf32> to vector<8x32xbf16>
    %c0_2 = arith.constant 0 : index
    %c0_3 = arith.constant 0 : index
    %c0_4 = arith.constant 0 : index
    %3 = vector.load %arg5[%c0_2, %c0_3, %c0_4] : memref<3x32x32xbf16, #tpu.memory_space<vmem>>, vector<1x32x32xbf16>
    %4 = vector.shape_cast %3 : vector<1x32x32xbf16> to vector<32x32xbf16>
    %cst = arith.constant dense<0.000000e+00> : vector<8x32xf32>
    %5 = tpu.matmul %2, %4, %cst {dimension_numbers = #tpu.dot_dimension_numbers<[1], [0], [0], [1], [0, 0, 1, 1], [], []>} : vector<8x32xbf16>, vector<32x32xbf16>, vector<8x32xf32> -> vector<8x32xf32>
    %c0_5 = arith.constant 0 : index
    %c0_6 = arith.constant 0 : index
    %c0_7 = arith.constant 0 : index
    %6 = vector.load %arg6[%c0_5, %c0_6, %c0_7] : memref<3x1x32xf32, #tpu.memory_space<vmem>>, vector<1x1x32xf32>
    %7 = vector.shape_cast %6 : vector<1x1x32xf32> to vector<1x32xf32>
    %8 = vector.broadcast %7 : vector<1x32xf32> to vector<8x32xf32>
    %9 = arith.addf %5, %8 : vector<8x32xf32>
    %10 = vector.shape_cast %9 : vector<8x32xf32> to vector<8x4x8xf32>
    %11 = tpu.transpose %10, [1, 0, 2] : vector<8x4x8xf32> -> vector<4x8x8xf32>
    %12 = arith.truncf %11 : vector<4x8x8xf32> to vector<4x8x8xbf16>
    %c0_8 = arith.constant 0 : index
    %c0_9 = arith.constant 0 : index
    %c0_10 = arith.constant 0 : index
    %13 = vector.load %arg7[%c0_8, %c0_9, %c0_10] : memref<4x8x8xbf16, #tpu.memory_space<vmem>>, vector<4x8x8xbf16>
    tpu.vector_store %arg7[%c0_8, %c0_9, %c0_10], %12 {strides = array<i32>} : memref<4x8x8xbf16, #tpu.memory_space<vmem>>, vector<4x8x8xbf16>,
    %c0_11 = arith.constant 0 : index
    %c0_12 = arith.constant 0 : index
    %c0_13 = arith.constant 0 : index
    %14 = vector.load %arg3[%c0_11, %c0_12, %c0_13] : memref<1x8x32xf32, #tpu.memory_space<vmem>>, vector<1x8x32xf32>
    %15 = vector.shape_cast %14 : vector<1x8x32xf32> to vector<8x32xf32>
    %16 = arith.truncf %15 : vector<8x32xf32> to vector<8x32xbf16>
    %c1 = arith.constant 1 : index
    %c0_14 = arith.constant 0 : index
    %c0_15 = arith.constant 0 : index
    %17 = vector.load %arg5[%c1, %c0_14, %c0_15] : memref<3x32x32xbf16, #tpu.memory_space<vmem>>, vector<1x32x32xbf16>
    %18 = vector.shape_cast %17 : vector<1x32x32xbf16> to vector<32x32xbf16>
    %cst_16 = arith.constant dense<0.000000e+00> : vector<8x32xf32>
    %19 = tpu.matmul %16, %18, %cst_16 {dimension_numbers = #tpu.dot_dimension_numbers<[1], [0], [0], [1], [0, 0, 1, 1], [], []>} : vector<8x32xbf16>, vector<32x32xbf16>, vector<8x32xf32> -> vector<8x32xf32>
    %c1_17 = arith.constant 1 : index
    %c0_18 = arith.constant 0 : index
    %c0_19 = arith.constant 0 : index
    %20 = vector.load %arg6[%c1_17, %c0_18, %c0_19] : memref<3x1x32xf32, #tpu.memory_space<vmem>>, vector<1x1x32xf32>
    %21 = vector.shape_cast %20 : vector<1x1x32xf32> to vector<1x32xf32>
    %22 = vector.broadcast %21 : vector<1x32xf32> to vector<8x32xf32>
    %23 = arith.addf %19, %22 : vector<8x32xf32>
    %24 = vector.shape_cast %23 : vector<8x32xf32> to vector<8x4x8xf32>
    %25 = tpu.transpose %24, [1, 0, 2] : vector<8x4x8xf32> -> vector<4x8x8xf32>
    %26 = arith.truncf %25 : vector<4x8x8xf32> to vector<4x8x8xbf16>
    %c0_20 = arith.constant 0 : index
    %c0_21 = arith.constant 0 : index
    %c0_22 = arith.constant 0 : index
    %27 = vector.load %arg8[%c0_20, %c0_21, %c0_22] : memref<4x8x8xbf16, #tpu.memory_space<vmem>>, vector<4x8x8xbf16>
    tpu.vector_store %arg8[%c0_20, %c0_21, %c0_22], %26 {strides = array<i32>} : memref<4x8x8xbf16, #tpu.memory_space<vmem>>, vector<4x8x8xbf16>,
    %c0_23 = arith.constant 0 : index
    %c0_24 = arith.constant 0 : index
    %c0_25 = arith.constant 0 : index
    %28 = vector.load %arg4[%c0_23, %c0_24, %c0_25] : memref<1x8x32xf32, #tpu.memory_space<vmem>>, vector<1x8x32xf32>
    %29 = vector.shape_cast %28 : vector<1x8x32xf32> to vector<8x32xf32>
    %30 = arith.truncf %29 : vector<8x32xf32> to vector<8x32xbf16>
    %c2 = arith.constant 2 : index
    %c0_26 = arith.constant 0 : index
    %c0_27 = arith.constant 0 : index
    %31 = vector.load %arg5[%c2, %c0_26, %c0_27] : memref<3x32x32xbf16, #tpu.memory_space<vmem>>, vector<1x32x32xbf16>
    %32 = vector.shape_cast %31 : vector<1x32x32xbf16> to vector<32x32xbf16>
    %cst_28 = arith.constant dense<0.000000e+00> : vector<8x32xf32>
    %33 = tpu.matmul %30, %32, %cst_28 {dimension_numbers = #tpu.dot_dimension_numbers<[1], [0], [0], [1], [0, 0, 1, 1], [], []>} : vector<8x32xbf16>, vector<32x32xbf16>, vector<8x32xf32> -> vector<8x32xf32>
    %c2_29 = arith.constant 2 : index
    %c0_30 = arith.constant 0 : index
    %c0_31 = arith.constant 0 : index
    %34 = vector.load %arg6[%c2_29, %c0_30, %c0_31] : memref<3x1x32xf32, #tpu.memory_space<vmem>>, vector<1x1x32xf32>
    %35 = vector.shape_cast %34 : vector<1x1x32xf32> to vector<1x32xf32>
    %36 = vector.broadcast %35 : vector<1x32xf32> to vector<8x32xf32>
    %37 = arith.addf %33, %36 : vector<8x32xf32>
    %38 = vector.shape_cast %37 : vector<8x32xf32> to vector<8x4x8xf32>
    %39 = tpu.transpose %38, [1, 0, 2] : vector<8x4x8xf32> -> vector<4x8x8xf32>
    %40 = arith.truncf %39 : vector<4x8x8xf32> to vector<4x8x8xbf16>
    %c0_32 = arith.constant 0 : index
    %c0_33 = arith.constant 0 : index
    %c0_34 = arith.constant 0 : index
    %41 = vector.load %arg9[%c0_32, %c0_33, %c0_34] : memref<4x8x8xbf16, #tpu.memory_space<vmem>>, vector<4x8x8xbf16>
    tpu.vector_store %arg9[%c0_32, %c0_33, %c0_34], %40 {strides = array<i32>} : memref<4x8x8xbf16, #tpu.memory_space<vmem>>, vector<4x8x8xbf16>,
    return
  }
  func.func @transform_0(%arg0: i32, %arg1: i32) -> (i32, i32, i32) {
    %c0_i32 = arith.constant 0 : i32
    %c0_i32_0 = arith.constant 0 : i32
    return %arg0, %arg1, %c0_i32 : i32, i32, i32
  }
  func.func @transform_1(%arg0: i32, %arg1: i32) -> (i32, i32, i32) {
    %c0_i32 = arith.constant 0 : i32
    %c0_i32_0 = arith.constant 0 : i32
    return %arg0, %arg1, %c0_i32 : i32, i32, i32
  }
  func.func @transform_2(%arg0: i32, %arg1: i32) -> (i32, i32, i32) {
    %c0_i32 = arith.constant 0 : i32
    %c0_i32_0 = arith.constant 0 : i32
    return %arg0, %arg1, %c0_i32 : i32, i32, i32
  }
  func.func @transform_3(%arg0: i32, %arg1: i32) -> (i32, i32, i32) {
    %c0_i32 = arith.constant 0 : i32
    %c0_i32_0 = arith.constant 0 : i32
    %c0_i32_1 = arith.constant 0 : i32
    %c0_i32_2 = arith.constant 0 : i32
    return %c0_i32, %c0_i32_0, %c0_i32_1 : i32, i32, i32
  }
  func.func @transform_4(%arg0: i32, %arg1: i32) -> (i32, i32, i32) {
    %c0_i32 = arith.constant 0 : i32
    %c0_i32_0 = arith.constant 0 : i32
    %c0_i32_1 = arith.constant 0 : i32
    %c0_i32_2 = arith.constant 0 : i32
    return %c0_i32, %c0_i32_0, %c0_i32_1 : i32, i32, i32
  }
  func.func @transform_5(%arg0: i32, %arg1: i32) -> (i32, i32, i32) {
    %c0_i32 = arith.constant 0 : i32
    %c0_i32_0 = arith.constant 0 : i32
    return %arg0, %arg1, %c0_i32 : i32, i32, i32
  }
  func.func @transform_6(%arg0: i32, %arg1: i32) -> (i32, i32, i32) {
    %c0_i32 = arith.constant 0 : i32
    %c0_i32_0 = arith.constant 0 : i32
    return %arg0, %arg1, %c0_i32 : i32, i32, i32
  }
  func.func @transform_7(%arg0: i32, %arg1: i32) -> (i32, i32, i32) {
    %c0_i32 = arith.constant 0 : i32
    %c0_i32_0 = arith.constant 0 : i32
    return %arg0, %arg1, %c0_i32 : i32, i32, i32
  }
}

</mosaic_0001>

<bundles_post_ra>
// kernel: tpu_custom_call.1
= control target key start
LH: loop header
LB: loop body
LE: loop exit
PB: predicated region body
PF: predicated region fallthrough
CT: control target
= control target key end

     0   :  { %s2288_s0 = inlined_call_operand.hbm [shape: f32[2,8,32], index: 0, kind: input, shape index: {}]   ;;  %s2289_s1 = inlined_call_operand.hbm [shape: f32[2,8,32], index: 1, kind: input, shape index: {}]   ;;  %s2290_s2 = inlined_call_operand.hbm [shape: f32[2,8,32], index: 2, kind: input, shape index: {}]   ;;  %s2291_s3 = inlined_call_operand.hbm [shape: bf16[3,32,32], index: 3, kind: input, shape index: {}]   ;;  %s2292_s4 = inlined_call_operand.vmem [shape: f32[3,1,32], index: 4, kind: input, shape index: {}]   ;;  %s2293_s5 = inlined_call_operand.hbm [shape: bf16[8,8,8], index: 5, kind: output, shape index: {0}]   ;;  %s2294_s6 = inlined_call_operand.hbm [shape: bf16[8,8,8], index: 6, kind: output, shape index: {1}]   ;;  %s2295_s7 = inlined_call_operand.hbm [shape: bf16[8,8,8], index: 7, kind: output, shape index: {2}]  }
   0x1   :  { %2306 = sst [smem:[#allocation25_spill]] %s2289_s1 }
   0x2   :  { %13 = vsyncpa [#allocation3], 0 }
   0x3   :  { %15 = vsyncpa [#allocation3 + $0x1], 0 }
   0x4   :  { %16 = vsyncpa [#allocation6], 0 }
   0x5   :  { %18 = vsyncpa [#allocation6 + $0x1], 0 }
   0x6   :  { %19 = vsyncpa [#allocation9], 0 }
   0x7   :  { %20 = vsyncpa [#allocation4], 0 }
   0x8   :  { %22 = vsyncpa [#allocation4 + $0x1], 0 }
   0x9   :  { %23 = vsyncpa [#allocation12], 0 }
   0xa   :  { %25 = vsyncpa [#allocation12 + $0x1], 0  ;;  %s1874_s24 = smov 0   ;;  %s1876_s25 = smov 0  }
   0xb   :  { %s1878_s26 = smov 0   ;;  %s1880_s27 = smov 0  }
   0xc   :  { %s1882_s28 = smov 0   ;;  %s1884_s29 = smov 0  }
   0xd LB: > { %2307 = sst [smem:[#allocation19_spill]] %s1794_s24  ;;  %s43_s30 = sadd.s32 1, %s1810_s28  ;;  %s1814_s29 = sphi %s1884_s29, %s31_s29   ;;  %s1810_s28 = sphi %s1882_s28, %s2333_s28   ;;  %s1806_s27 = sphi %s1880_s27, %s2332_s27   ;;  %s1802_s26 = sphi %s1878_s26, %s2336_s26   ;;  %s1798_s25 = sphi %s1876_s25, %s2335_s25   ;;  %s1794_s24 = sphi %s1874_s24, %s2334_s24  }
   0xe   : > { %2308 = sst [smem:[#allocation20_spill]] %s1810_s28  ;;  %s52_s8 = sadd.s32 1, %s1802_s26 }
   0xf   : > { %2309 = sst [smem:[#allocation21_spill]] %s1814_s29  ;;  %p45_p0 = scmp.ge.s32.totalorder %s43_s30, 2 }
  0x10   : > { %p59_p1 = scmp.ne.s32.totalorder %s1802_s26, %s1798_s25  ;;  %p60_p2 = scmp.eq.s32.totalorder %s1814_s29, 0 }
  0x11   : > { %s2338_s30 = smov (%p45_p0, %s43_s30), 0  ;;  %p1491_p5 = scmp.lt.s32.totalorder %s1814_s29, 2 }
  0x12   : > { %2310 = sst [smem:[#allocation22_spill]] %s2338_s30  ;;  %p61_p4 = por %p60_p2, %p59_p1 }
  0x13   : > { %s47_s9 = ssub.s32 %s1810_s28, %s2338_s30  ;;  %s2297_s10 = sand.u32 1, %s1802_s26  }
  0x14   : > { %p50_p6 = scmp.eq.s32.totalorder %s47_s9, 0  ;;  %s1921_s11 = sshll.u32 %s2297_s10, 3 }
  0x15   : > { %s1924_s12 = sshll.u32 %s1810_s28, 7  ;;  %p1926_p7 = pnand %p1491_p5, %p61_p4 }
  0x16   : > { %s1931_s14 = scalar_select %p50_p6, %s1802_s26, %s52_s8  }
  0x17   : > { %s306_s15 = sand.u32 1, %s1814_s29   ;;  %s2313_s1 = sld [smem:[#allocation25_spill]] }
  0x18   : > { %2312 = sst [smem:[#allocation23_spill]] %s1931_s14  ;;  %s310_s19 = scalar_lea.vmem [#allocation5], %s1921_s11 }
  0x19   : > { %s318_s20 = sshll.u32 %s310_s19, 4  ;;  %s1939_s21 = scalar_lea.sflag [#allocation6], %s306_s15  ;;  %s319_s20 = int_to_ptr.vmem [resolvable:$true] %s318_s20 }
  0x1a   : > { %p2300_p8 = pneg %p1926_p7  ;;  %s1573_s22 = scalar_lea.vmem %s319_s20, 128 }
  0x1b   : > { %p1574_p9 = scmp.ne.s32.totalorder %s319_s20, %s1573_s22  ;;  %s1816_s23 = smov [#allocation5]  }
  0x1c   : > { %s1578_s8 = sshll.u32 %s1816_s23, 4  ;;  %s1579_s8 = int_to_ptr.vmem [resolvable:$false] %s1578_s8 }
  0x1d   : > { %s316_s18 = scalar_lea.hbm %s2313_s1, %s1924_s12  ;;  %p1576_p10 = pnand %p1574_p9, %p2300_p8 }
  0x1e   : > { %s1580_s9 = scalar_lea.vmem %s1579_s8, 256  ;;  %p1581_p12 = scmp.lt.s32.totalorder %s319_s20, %s1579_s8 }
  0x1f   : > { %p1577_p11 = pneg %p1576_p10  ;;  %p1582_p13 = scmp.lt.s32.totalorder %s1580_s9, %s1573_s22 }
  0x21   : > { %p1583_p0 = por %p1582_p13, %p1581_p12 }
  0x23   : > { %p1584_p2 = pnand %p1583_p0, %p1577_p11 }
  0x25   : > { %1587 = shalt.err (!%p1584_p2)
}
  0x26   : > { %1476 = dma.hbm_to_vmem [thread:$0]  (!%p1926_p7), %s316_s18, 128, %s319_s20, %s1939_s21  }
  0x27   : > { %s1950_s15 = sadd.s32 4294967295, %s1814_s29   ;;  %s2296_s16 = sadd.s32 4294967294, %s1814_s29  }
  0x28   : > { %p65_p4 = scmp.ne.s32.totalorder %s1798_s25, %s1794_s24  ;;  %p2299_p5 = scmp.eq.s32.totalorder %s1950_s15, 0 }
  0x29   : > { %p189_p6 = scmp.eq.s32.totalorder %s1950_s15, 1  ;;  %p195_p9 = scmp.eq.s32.totalorder %s2296_s16, 1 }
  0x2a   : > { %p1366_p10 = scmp.ge.s32.totalorder %s1814_s29, 1  ;;  %p1962_p11 = por %p2299_p5, %p65_p4 }
  0x2b   : > { %p1969_p12 = por %p189_p6, %p59_p1  ;;  %p1973_p13 = por %p195_p9, %p65_p4 }
  0x2c   : > { %p258_p0 = scmp.lt.s32.totalorder %s1814_s29, 3  ;;  %s1817_s22 = smov [#allocation8]  }
  0x2d   : > { %s2316_s19 = scalar_select %p1973_p13, 1, 0 }
  0x2e   : > { %p1978_p2 = pnand %p1366_p10, %p258_p0  ;;  %s270_s23 = sshll.u32 %s1817_s22, 4  ;;  %s271_s23 = int_to_ptr.vmem [resolvable:$true] %s270_s23 }
  0x2f   : > { %2317 = sst [smem:[#allocation24_spill]] %s2316_s19  ;;  %s291_s1 = scalar_lea.vmem [#allocation2], %s1921_s11 }
  0x30   : > { %p1466_p3 = pneg %p1978_p2  ;;  %s299_s30 = sshll.u32 %s291_s1, 4  ;;  %s1995_s30 = int_to_ptr.vmem [resolvable:$true] %s299_s30 }
  0x31   : > { %s1599_s22 = scalar_lea.vmem %s271_s23, 768  ;;  %p1607_p0 = scmp.lt.s32.totalorder %s271_s23, %s271_s23 }
  0x32   : > { %p1986_p1 = pnand %p1466_p3, %p2299_p5  ;;  %p1600_p6 = scmp.ne.s32.totalorder %s271_s23, %s1599_s22 }
  0x33   : > { %p1608_p3 = scmp.lt.s32.totalorder %s1599_s22, %s1599_s22 }
  0x34   : > { %p1590_p4 = pneg %p1986_p1 }
  0x35   : > { %p1609_p5 = por %p1608_p3, %p1607_p0 }
  0x36   : > { %p1602_p9 = pnand %p1600_p6, %p1590_p4 }
  0x38   : > { %p1603_p10 = pneg %p1602_p9 }
  0x3a   : > { %p1610_p8 = pnand %p1609_p5, %p1603_p10 }
  0x3c   : > { %1613 = shalt.err (!%p1610_p8)
}
  0x3d   : > { %s1818_s28 = smov 64   ;;  %s1819_s1 = smov 4  }
  0x3e   : > { %1469 = dma.hbm_to_vmem [thread:$0]  (!%p1986_p1), %s2291_s3, 768, %s271_s23, [#allocation9], %s1818_s28, %s1818_s28, %s1819_s1  }
  0x3f   : > { %s2320_s10 = sand.u32 1, %s1802_s26   ;;  %s1627_s29 = scalar_lea.vmem %s1995_s30, 128 }
  0x40   : > { %s288_s14 = scalar_lea.sflag [#allocation3], %s2320_s10  ;;  %p1628_p4 = scmp.ne.s32.totalorder %s1995_s30, %s1627_s29 }
  0x41   : > { %p2321_p5 = pneg %p1926_p7  ;;  %s1820_s22 = smov [#allocation2]  }
  0x42   : > { %s1632_s19 = sshll.u32 %s1820_s22, 4  ;;  %s1633_s19 = int_to_ptr.vmem [resolvable:$false] %s1632_s19 }
  0x43   : > { %p1630_p8 = pnand %p1628_p4, %p2321_p5  ;;  %s1634_s24 = scalar_lea.vmem %s1633_s19, 256 }
  0x44   : > { %p1635_p9 = scmp.lt.s32.totalorder %s1995_s30, %s1633_s19  ;;  %p1636_p10 = scmp.lt.s32.totalorder %s1634_s24, %s1627_s29 }
  0x45   : > { %p1631_p6 = pneg %p1630_p8 }
  0x46   : > { %p1637_p0 = por %p1636_p10, %p1635_p9 }
  0x48   : > { %p1638_p3 = pnand %p1637_p0, %p1631_p6 }
  0x4a   : > { %1641 = shalt.err (!%p1638_p3)
}
  0x4b   : > { %s2322_s23 = scalar_lea.hbm %s2288_s0, %s1924_s12  ;;  %s335_s19 = scalar_lea.hbm %s2290_s2, %s1924_s12 }
  0x4c   : > { %1473 = dma.hbm_to_vmem [thread:$0]  (!%p1926_p7), %s2322_s23, 128, %s1995_s30, %s288_s14  }
  0x4d   : > { %s329_s24 = scalar_lea.vmem [#allocation7], %s1921_s11  ;;  %p2323_p4 = pmov %p2321_p5 }
  0x4e   : > { %s337_s29 = sshll.u32 %s329_s24, 4  ;;  %s1821_s9 = smov [#allocation7]   ;;  %s338_s29 = int_to_ptr.vmem [resolvable:$true] %s337_s29 }
  0x4f   : > { %s1655_s16 = scalar_lea.vmem %s338_s29, 128  ;;  %s1660_s22 = sshll.u32 %s1821_s9, 4  ;;  %s1661_s22 = int_to_ptr.vmem [resolvable:$false] %s1660_s22 }
  0x50   : > { %p1656_p1 = scmp.ne.s32.totalorder %s338_s29, %s1655_s16  ;;  %s1662_s28 = scalar_lea.vmem %s1661_s22, 256 }
  0x51   : > { %p1663_p6 = scmp.lt.s32.totalorder %s338_s29, %s1661_s22  ;;  %p1664_p9 = scmp.lt.s32.totalorder %s1662_s28, %s1655_s16 }
  0x52   : > { %p1658_p5 = pnand %p1656_p1, %p2323_p4 }
  0x53   : > { %p1665_p10 = por %p1664_p9, %p1663_p6 }
  0x54   : > { %p1659_p8 = pneg %p1658_p5 }
  0x56   : > { %p1666_p0 = pnand %p1665_p10, %p1659_p8 }
  0x58   : > { %1669 = shalt.err (!%p1666_p0)
}
  0x59   : > { %1479 = dma.hbm_to_vmem [thread:$0]  (!%p1926_p7), %s335_s19, 128, %s338_s29, %s1939_s21  }
  0x5a   : > { %346 = sbr.rel (%p1978_p2) target bundleno = 509 (0x1fd), region = 40  ;;  %s2034_s30 = sand.u32 (!%p1978_p2), 1, %s1798_s25  }
  0x5b   : > { %s2037_s11 = sshll.u32 (!%p1978_p2), %s2034_s30, 3  ;;  %s349_s12 = scalar_lea.sflag (!%p1978_p2), [#allocation3], %s2034_s30 }
  0x5c   : > { %s352_s14 = scalar_lea.vmem (!%p1978_p2), [#allocation2], %s2037_s11 }
  0x5f   : > { %1773 = dma.done.wait (%p1962_p11), %s349_s12, 128  }
  0x60   : > { %1775 = vsyncadd (%p1962_p11), %s349_s12, 4294967168  ;;  %s357_s13 = sand.u32 1, %s1950_s15   ;;  %s361_s20 = scalar_lea.vmem [#allocation5], %s2037_s11 }
  0x61   : > { %s358_s21 = scalar_lea.sflag [#allocation6], %s357_s13 }
  0x62   : > { %1777 = dma.done.wait (%p1962_p11), %s358_s21, 256  }
  0x63   : > { %1779 = vsyncadd (%p1962_p11), %s358_s21, 4294967040  ;;  %s370_s10 = scalar_lea.vmem [#allocation7], %s2037_s11  ;;  %p2324_p7 = scmp.eq.s32.totalorder %s1950_s15, 0 }
  0x65   : > { %1781 = dma.done.wait (%p2324_p7), [#allocation9], 768   ;;  %p2325_p2 = pmov %p2324_p7 }
  0x66   : > { %v1822_v0 = vmov 0.0   ;;  %vm1823_vm0 = vmmov 0   ;;  %v1554_v1 = vld [vmem:[#allocation8 + $0x8] sm:$0xff]   ;;  %v1555_v2 = vld [vmem:[#allocation8 + $0x18] sm:$0xff]   ;;  %v1556_v3 = vld [vmem:[#allocation8] sm:$0xff]   ;;  %vm454_vm1 = vcmask 261120   ;;  %v513_v33 = vlaneseq }
  0x67   : > { %1783 = vsyncadd (%p2325_p2), [#allocation9], 4294966528  ;;  %1426 = vmatprep.subr.bf16.mxu0 %v1822_v0  ;;  %1434 = vmatprep.subr.bf16.mxu1 %v1822_v0  ;;  %v1557_v4 = vld [vmem:[#allocation8 + $0x10] sm:$0xff]   ;;  %v653_v6 = vld [vmem:[%s361_s20] sm:$0xff]  ;;  %s1824_s19 = smov 104   ;;  %s1825_s24 = smov 120  }
  0x68   : > { %1430 = vmatprep.mubr.msk.bf16.mxu0 %vm1823_vm0, %v1822_v0  ;;  %1438 = vmatprep.mubr.msk.bf16.mxu1 %vm1823_vm0, %v1822_v0  ;;  %v429_v5 = vld [vmem:[%s352_s14] sm:$0xff]  ;;  %v654_v8 = vpack.c.bf16 %v653_v6, %v653_v6  ;;  %v1558_v9 = vld [vmem:[#allocation8 + $0x28] sm:$0xff]   ;;  %v1559_v10 = vld [vmem:[#allocation8 + $0x20] sm:$0xff]   ;;  %s1826_s29 = smov 112   ;;  %v1827_v31 = vmov 1983009808  }
  0x69   : > { %1427 = vmatpush3.bf16.msra.mxu0 %v1554_v1  ;;  %1435 = vmatpush3.bf16.msra.mxu1 %v1555_v2  ;;  %v430_v7 = vpack.c.bf16 %v429_v5, %v429_v5  ;;  %v877_v11 = vld [vmem:[%s370_s10] sm:$0xff]  ;;  %v511_v32 = vunpack.c.l.s4 %v1827_v31  ;;  %v1828_v34 = vmov 1934713408   ;;  %v514_v37 = vshrl.u32 %v513_v33, 7  ;;  %s2102_s22 = sshll.u32 %s2034_s30, 4  ;;  %s2113_s28 = sshll.u32 %s1806_s27, 8 }
  0x6a   : > { %1428 = vmatprep.subr.bf16.mxu0 %v1822_v0  ;;  %1436 = vmatprep.subr.bf16.mxu1 %v1822_v0  ;;  %v878_v12 = vpack.c.bf16 %v877_v11, %v877_v11  ;;  %v1390_v13 = vld [vmem:[%s2292_s4 + $0x1] ss:$0 sm:$0xff]  ;;  %v1383_v15 = vld [vmem:[%s2292_s4] ss:$0 sm:$0xff]  ;;  %v1397_v26 = vld [vmem:[%s2292_s4 + $0x2] ss:$0 sm:$0xff]  ;;  %v543_v35 = vunpack.c.l.s4 %v1828_v34  ;;  %s2120_s21 = scalar_lea.hbm %s2294_s6, %s2113_s28 }
  0x6b   : > { %v512_v36 = vunpack.c.0.s8 %v511_v32  ;;  %vm648_vm2 = vcmask 60416   ;;  %s417_s11 = scalar_lea.vmem [#allocation11], %s2102_s22  ;;  %s2137_s20 = scalar_lea.vmem [#allocation10], %s2102_s22 }
  0x6c   : > { %v544_v40 = vunpack.c.0.s8 %v543_v35  ;;  %s1143_s12 = sshll.u32 %s417_s11, 4  ;;  %s1126_s10 = sshll.u32 %s2137_s20, 4  ;;  %s2122_s12 = int_to_ptr.vmem [resolvable:$true] %s1143_s12  ;;  %s2180_s10 = int_to_ptr.vmem [resolvable:$true] %s1126_s10 }
  0x6d   : > { %1429 = vmatpush3.bf16.msra.mxu0 %v1556_v3  ;;  %1437 = vmatpush3.bf16.msra.mxu1 %v1557_v4  ;;  %v2075_v41 = vsub.s32 %v512_v36, %v514_v37  ;;  %s2142_s17 = scalar_lea.sflag [#allocation12], %s357_s13  ;;  %s1670_s23 = scalar_lea.vmem %s2122_s12, 256 }
  0x6e   : > { %1442 = vmatprep.subr.bf16.mxu0 %v1822_v0  ;;  %v2077_v48 = vsub.s32 %v544_v40, %v514_v37  ;;  %p1671_p11 = scmp.ne.s32.totalorder %s2122_s12, %s1670_s23  ;;  %s1829_s8 = smov [#allocation11]  }
  0x6f   : > { %s1674_s1 = sshll.u32 %s1829_s8, 4  ;;  %s1675_s1 = int_to_ptr.vmem [resolvable:$false] %s1674_s1 }
  0x70   : > { %1431 = vmatmul.mubr.msk.bf16.vlgmr.msra.gmra.mxu0 %vm454_vm1, %v430_v7  ;;  %1439 = vmatmul.mubr.msk.bf16.vlgmr.msra.gmra.mxu1 %vm454_vm1, %v654_v8  ;;  %p1672_p3 = pnand %p1671_p11, %p1969_p12  ;;  %p1677_p4 = scmp.lt.s32.totalorder %s2122_s12, %s1675_s1 }
  0x71   : > { %1443 = vmatpush3.bf16.msra.mxu0 %v1558_v9  ;;  %1446 = vmatprep.mubr.msk.bf16.mxu0 %vm1823_vm0, %v1822_v0 }
  0x72   : > { %1444 = vmatprep.subr.bf16.mxu0 %v1822_v0  ;;  %p1673_p1 = pneg %p1672_p3 }
  0x75   : > { %1445 = vmatpush3.bf16.msra.mxu0 %v1559_v10 }
  0x78   : > { %1447 = vmatmul.mubr.msk.bf16.vlgmr.msra.gmra.mxu0 %vm454_vm1, %v878_v12 }
 0x130   : > { %v492_v14 = vpop.f32.mrf.mxu0  ;;  %v717_v16 = vpop.f32.mrf.mxu1 }
 0x131   : > { %v718_v17 = vadd.f32 %v1390_v13, %v717_v16  ;;  %v493_v20 = vadd.f32 %v1383_v15, %v492_v14 }
 0x132   : > { %v1432_v18 = vpop.f32.mrf.mxu0  ;;  %v1440_v19 = vpop.f32.mrf.mxu1 }
 0x133   : > { %730 = vrot.lane.b32.xlu1 %v718_v17, %s1824_s19  ;;  %724 = vrot.lane.b32.xlu0 %v718_v17, %s1825_s24 }
 0x134   : > { %v495_v21 = vpop.f32.mrf.mxu0  ;;  %v720_v22 = vpop.f32.mrf.mxu1 }
 0x136   : > { %v1433_v23 = vpop.f32.mrf.mxu0  ;;  %v1441_v24 = vpop.f32.mrf.mxu1 }
 0x137   : > { %727 = vrot.lane.b32.xlu0 %v718_v17, %s1826_s29  ;;  %499 = vrot.lane.b32.xlu1 %v493_v20, %s1825_s24 }
 0x138   : > { %v941_v25 = vpop.f32.mrf.mxu0 }
 0x139   : > { %v2070_v28 = vadd.f32 %v1397_v26, %v941_v25 }
 0x13a   : > { %v1448_v27 = vpop.f32.mrf.mxu0 }
 0x13b   : > { %502 = vrot.lane.b32.xlu0 %v493_v20, %s1826_s29  ;;  %505 = vrot.lane.b32.xlu1 %v493_v20, %s1824_s19 }
 0x13c   : > { %v944_v29 = vpop.f32.mrf.mxu0 }
 0x13e   : > { %v1449_v30 = vpop.f32.mrf.mxu0 }
 0x13f   : > { %951 = vrot.lane.b32.xlu1 %v2070_v28, %s1826_s29  ;;  %948 = vrot.lane.b32.xlu0 %v2070_v28, %s1825_s24 }
 0x143   : > { %954 = vrot.lane.b32.xlu0 %v2070_v28, %s1824_s19  ;;  %s1676_s19 = scalar_lea.vmem %s1675_s1, 512 }
 0x144   : > { %p1678_p5 = scmp.lt.s32.totalorder %s1676_s19, %s1670_s23 }
 0x146   : > { %p1679_p8 = por %p1678_p5, %p1677_p4 }
 0x148   : > { %p1680_p6 = pnand %p1679_p8, %p1673_p1 }
 0x1a5   : > { %v731_v38 = vpop.permute.xlu1 %730  ;;  %v725_v39 = vpop.permute.xlu0 %724 }
 0x1a6   : > { %v749_v42 = vcombine.low %v725_v39, %v731_v38  ;;  %v750_v43 = vcombine.high %v725_v39, %v731_v38 }
 0x1a8   : > { %v757_v49 = vrot.slane %v749_v42, %v2075_v41  ;;  %v764_v50 = vrot.slane %v750_v43, %v2075_v41 }
 0x1a9   : > { %v728_v44 = vpop.permute.xlu0 %727  ;;  %v500_v45 = vpop.permute.xlu1 %499 }
 0x1aa   : > { %v733_v46 = vcombine.low %v718_v17, %v728_v44  ;;  %v734_v47 = vcombine.high %v718_v17, %v728_v44 }
 0x1ac   : > { %v741_v51 = vrot.slane %v733_v46, %v2075_v41  ;;  %v748_v52 = vrot.slane %v734_v47, %v2075_v41 }
 0x1ad   : > { %v503_v53 = vpop.permute.xlu0 %502  ;;  %v506_v54 = vpop.permute.xlu1 %505 }
 0x1ae   : > { %v765_v55 = vcombine.low %v741_v51, %v757_v49  ;;  %v766_v56 = vcombine.high %v741_v51, %v757_v49  ;;  %v781_v57 = vcombine.low %v748_v52, %v764_v50  ;;  %v782_v58 = vcombine.high %v748_v52, %v764_v50 }
 0x1af   : > { %v508_v59 = vcombine.low %v493_v20, %v503_v53  ;;  %v509_v60 = vcombine.high %v493_v20, %v503_v53  ;;  %v524_v61 = vcombine.low %v500_v45, %v506_v54  ;;  %v525_v62 = vcombine.high %v500_v45, %v506_v54 }
 0x1b0   : > { %v773_v63 = vrot.slane %v765_v55, %v2077_v48  ;;  %v780_v0 = vrot.slane %v766_v56, %v2077_v48  ;;  %v789_v1 = vrot.slane %v781_v57, %v2077_v48  ;;  %v796_v2 = vrot.slane %v782_v58, %v2077_v48 }
 0x1b1   : > { %v516_v3 = vrot.slane %v508_v59, %v2075_v41  ;;  %v523_v4 = vrot.slane %v509_v60, %v2075_v41  ;;  %v532_v5 = vrot.slane %v524_v61, %v2075_v41  ;;  %v539_v6 = vrot.slane %v525_v62, %v2075_v41  ;;  %v2099_v23 = vpop.permute.xlu0 %948  ;;  %v952_v51 = vpop.permute.xlu1 %951 }
 0x1b2   : > { %v801_v7 = vcombine.low %v773_v63, %v780_v0  ;;  %v1394_v8 = vcombine.high %v773_v63, %v780_v0  ;;  %v817_v9 = vcombine.low %v789_v1, %v796_v2  ;;  %v1395_v10 = vcombine.high %v789_v1, %v796_v2 }
 0x1b3   : > { %v540_v11 = vcombine.low %v516_v3, %v532_v5  ;;  %v541_v12 = vcombine.high %v516_v3, %v532_v5  ;;  %v556_v13 = vcombine.low %v523_v4, %v539_v6  ;;  %v557_v14 = vcombine.high %v523_v4, %v539_v6 }
 0x1b4   : > { %v808_v15 = vrot.slane %v801_v7, %v2075_v41  ;;  %v816_v16 = vrot.slane %v1394_v8, %v2075_v41  ;;  %v824_v17 = vrot.slane %v817_v9, %v2075_v41  ;;  %v832_v18 = vrot.slane %v1395_v10, %v2075_v41 }
 0x1b5   : > { %v548_v19 = vrot.slane %v540_v11, %v2077_v48  ;;  %v555_v20 = vrot.slane %v541_v12, %v2077_v48  ;;  %v564_v21 = vrot.slane %v556_v13, %v2077_v48  ;;  %v571_v22 = vrot.slane %v557_v14, %v2077_v48  ;;  %v955_v52 = vpop.permute.xlu0 %954 }
 0x1b6   : > { %v833_v24 = vcombine.low %v808_v15, %v816_v16  ;;  %v834_v25 = vcombine.high %v808_v15, %v816_v16  ;;  %v849_v26 = vcombine.low %v824_v17, %v832_v18  ;;  %v850_v27 = vcombine.high %v824_v17, %v832_v18 }
 0x1b7   : > { %v576_v29 = vcombine.low %v548_v19, %v555_v20  ;;  %v1387_v30 = vcombine.high %v548_v19, %v555_v20  ;;  %v592_v31 = vcombine.low %v564_v21, %v571_v22  ;;  %v1388_v32 = vcombine.high %v564_v21, %v571_v22 }
 0x1b8   : > { %v841_v33 = vrot.slane %v833_v24, %v2077_v48  ;;  %v848_v34 = vrot.slane %v834_v25, %v2077_v48  ;;  %v857_v35 = vrot.slane %v849_v26, %v2077_v48  ;;  %v864_v36 = vrot.slane %v850_v27, %v2077_v48 }
 0x1b9   : > { %v583_v37 = vrot.slane %v576_v29, %v2075_v41  ;;  %v591_v38 = vrot.slane %v1387_v30, %v2075_v41  ;;  %v599_v39 = vrot.slane %v592_v31, %v2075_v41  ;;  %v607_v40 = vrot.slane %v1388_v32, %v2075_v41 }
 0x1ba   : > { %v865_v42 = vcombine.low %v841_v33, %v857_v35  ;;  %v866_v43 = vcombine.high %v841_v33, %v857_v35  ;;  %v867_v44 = vcombine.low %v848_v34, %v864_v36  ;;  %v868_v45 = vcombine.high %v848_v34, %v864_v36 }
 0x1bb   : > { %v608_v46 = vcombine.low %v583_v37, %v591_v38  ;;  %v609_v47 = vcombine.high %v583_v37, %v591_v38  ;;  %v624_v49 = vcombine.low %v599_v39, %v607_v40  ;;  %v625_v50 = vcombine.high %v599_v39, %v607_v40 }
 0x1bc   : > { %v869_v53 = vpack.c.bf16 %v865_v42, %v865_v42  ;;  %v870_v54 = vpack.c.bf16 %v866_v43, %v866_v43  ;;  %v871_v55 = vpack.c.bf16 %v867_v44, %v867_v44  ;;  %v872_v56 = vpack.c.bf16 %v868_v45, %v868_v45 }
 0x1bd   : > { %v616_v57 = vrot.slane %v608_v46, %v2077_v48  ;;  %v623_v58 = vrot.slane %v609_v47, %v2077_v48  ;;  %v632_v59 = vrot.slane %v624_v49, %v2077_v48  ;;  %v639_v60 = vrot.slane %v625_v50, %v2077_v48 }
 0x1be   : > { %v957_v61 = vcombine.low %v2070_v28, %v952_v51  ;;  %v958_v62 = vcombine.high %v2070_v28, %v952_v51  ;;  %v973_v63 = vcombine.low %v2099_v23, %v955_v52  ;;  %v974_v0 = vcombine.high %v2099_v23, %v955_v52  ;;  %873 = vst.msk [vmem:[%s417_s11] sm:$0xf] %vm648_vm2, %v869_v53 }
 0x1bf   : > { %874 = vst.msk [vmem:[%s417_s11 + $0x4] sm:$0xf] %vm648_vm2, %v870_v54  ;;  %875 = vst.msk [vmem:[%s417_s11 + $0x8] sm:$0xf] %vm648_vm2, %v871_v55  ;;  %v640_v1 = vcombine.low %v616_v57, %v632_v59  ;;  %v641_v28 = vcombine.high %v616_v57, %v632_v59  ;;  %v642_v2 = vcombine.low %v623_v58, %v639_v60 }
 0x1c0   : > { %876 = vst.msk [vmem:[%s417_s11 + $0xc] sm:$0xf] %vm648_vm2, %v872_v56  ;;  %v643_v3 = vcombine.high %v623_v58, %v639_v60 }
 0x1c1   : > { %1683 = shalt.err (!%p1680_p6)
}
 0x1c2   : > { %s1684_s15 = scalar_lea.hbm %s2120_s21, 256  ;;  %s1688_s29 = scalar_lea.hbm %s2294_s6, 512 }
 0x1c3   : > { %p1685_p9 = scmp.ne.s32.totalorder %s2120_s21, %s1684_s15  ;;  %p1689_p7 = scmp.lt.s32.totalorder %s2120_s21, %s2294_s6 }
 0x1c4   : > { %p1690_p2 = scmp.lt.s32.totalorder %s1688_s29, %s1684_s15 }
 0x1c5   : > { %p1686_p10 = pnand %p1685_p9, %p1969_p12 }
 0x1c6   : > { %p1691_p11 = por %p1690_p2, %p1689_p7 }
 0x1c7   : > { %p1687_p0 = pneg %p1686_p10 }
 0x1c9   : > { %p1692_p3 = pnand %p1691_p11, %p1687_p0 }
 0x1cb   : > { %1695 = shalt.err (!%p1692_p3)
}
 0x1cc   : > { %s1830_s11 = smov 64   ;;  %s1831_s27 = smov 4   ;;  %v965_v4 = vrot.slane %v957_v61, %v2075_v41  ;;  %v972_v5 = vrot.slane %v958_v62, %v2075_v41  ;;  %v981_v6 = vrot.slane %v973_v63, %v2075_v41  ;;  %v988_v7 = vrot.slane %v974_v0, %v2075_v41 }
 0x1cd   : > { %1461 = dma.vmem_to_hbm [thread:$0]  (%p1969_p12), %s2122_s12, 256, %s2120_s21, %s2142_s17, %s1830_s11, %s1830_s11, %s1831_s27   ;;  %v644_v8 = vpack.c.bf16 %v640_v1, %v640_v1  ;;  %v645_v9 = vpack.c.bf16 %v641_v28, %v641_v28  ;;  %v646_v10 = vpack.c.bf16 %v642_v2, %v642_v2  ;;  %v647_v11 = vpack.c.bf16 %v643_v3, %v643_v3 }
 0x1ce   : > { %s2176_s12 = scalar_lea.hbm %s2293_s5, %s2113_s28  ;;  %v989_v12 = vcombine.low %v965_v4, %v981_v6  ;;  %v990_v13 = vcombine.high %v965_v4, %v981_v6  ;;  %v1005_v14 = vcombine.low %v972_v5, %v988_v7  ;;  %v1006_v15 = vcombine.high %v972_v5, %v988_v7  ;;  %s1102_s21 = scalar_lea.sflag [#allocation4], %s2034_s30 }
 0x1cf   : > { %649 = vst.msk [vmem:[%s2137_s20] sm:$0xf] %vm648_vm2, %v644_v8  ;;  %650 = vst.msk [vmem:[%s2137_s20 + $0x4] sm:$0xf] %vm648_vm2, %v645_v9  ;;  %s1696_s8 = scalar_lea.vmem %s2180_s10, 256  ;;  %s1832_s1 = smov [#allocation10]  }
 0x1d0   : > { %651 = vst.msk [vmem:[%s2137_s20 + $0x8] sm:$0xf] %vm648_vm2, %v646_v10  ;;  %652 = vst.msk [vmem:[%s2137_s20 + $0xc] sm:$0xf] %vm648_vm2, %v647_v11  ;;  %v997_v16 = vrot.slane %v989_v12, %v2077_v48  ;;  %v1004_v17 = vrot.slane %v990_v13, %v2077_v48  ;;  %v1013_v18 = vrot.slane %v1005_v14, %v2077_v48  ;;  %p1697_p1 = scmp.ne.s32.totalorder %s2180_s10, %s1696_s8  ;;  %s1700_s19 = sshll.u32 %s1832_s1, 4  ;;  %s1701_s19 = int_to_ptr.vmem [resolvable:$false] %s1700_s19 }
 0x1d1   : > { %v1020_v19 = vrot.slane %v1006_v15, %v2077_v48  ;;  %s1702_s15 = scalar_lea.vmem %s1701_s19, 512  ;;  %p1703_p8 = scmp.lt.s32.totalorder %s2180_s10, %s1701_s19 }
 0x1d2   : > { %p1698_p4 = pnand %p1697_p1, %p1969_p12  ;;  %p1704_p6 = scmp.lt.s32.totalorder %s1702_s15, %s1696_s8 }
 0x1d4   : > { %p1699_p5 = pneg %p1698_p4  ;;  %p1705_p9 = por %p1704_p6, %p1703_p8 }
 0x1d6   : > { %p1706_p10 = pnand %p1705_p9, %p1699_p5 }
 0x1d8   : > { %1709 = shalt.err (!%p1706_p10)
}
 0x1d9   : > { %s1710_s20 = scalar_lea.hbm %s2176_s12, 256  ;;  %s1714_s24 = scalar_lea.hbm %s2293_s5, 512 }
 0x1da   : > { %p1711_p0 = scmp.ne.s32.totalorder %s2176_s12, %s1710_s20  ;;  %p1715_p11 = scmp.lt.s32.totalorder %s2176_s12, %s2293_s5 }
 0x1db   : > { %p1716_p3 = scmp.lt.s32.totalorder %s1714_s24, %s1710_s20 }
 0x1dc   : > { %p1712_p7 = pnand %p1711_p0, %p1969_p12 }
 0x1dd   : > { %p1717_p1 = por %p1716_p3, %p1715_p11 }
 0x1de   : > { %p1713_p2 = pneg %p1712_p7 }
 0x1e0   : > { %p1718_p4 = pnand %p1717_p1, %p1713_p2 }
 0x1e2   : > { %1721 = shalt.err (!%p1718_p4)
}
 0x1e3   : > { %1460 = dma.vmem_to_hbm [thread:$0]  (%p1969_p12), %s2180_s10, 256, %s2176_s12, %s1102_s21, %s1830_s11, %s1830_s11, %s1831_s27   ;;  %v1025_v20 = vcombine.low %v997_v16, %v1004_v17  ;;  %v1401_v21 = vcombine.high %v997_v16, %v1004_v17  ;;  %v1041_v22 = vcombine.low %v1013_v18, %v1020_v19  ;;  %v1402_v23 = vcombine.high %v1013_v18, %v1020_v19 }
 0x1e4   : > { %s424_s10 = scalar_lea.vmem [#allocation13], %s2102_s22  ;;  %s2231_s12 = scalar_lea.hbm %s2295_s7, %s2113_s28 }
 0x1e5   : > { %v1032_v24 = vrot.slane %v1025_v20, %v2075_v41  ;;  %v1040_v25 = vrot.slane %v1401_v21, %v2075_v41  ;;  %v1048_v26 = vrot.slane %v1041_v22, %v2075_v41  ;;  %v1056_v27 = vrot.slane %v1402_v23, %v2075_v41  ;;  %s1160_s9 = sshll.u32 %s424_s10, 4  ;;  %s1833_s28 = smov [#allocation13]   ;;  %s2233_s9 = int_to_ptr.vmem [resolvable:$true] %s1160_s9 }
 0x1e6   : > { %s1722_s22 = scalar_lea.vmem %s2233_s9, 256  ;;  %s1726_s21 = sshll.u32 %s1833_s28, 4  ;;  %s1727_s21 = int_to_ptr.vmem [resolvable:$false] %s1726_s21 }
 0x1e7   : > { %v1057_v29 = vcombine.low %v1032_v24, %v1040_v25  ;;  %v1058_v30 = vcombine.high %v1032_v24, %v1040_v25  ;;  %v1073_v31 = vcombine.low %v1048_v26, %v1056_v27  ;;  %v1074_v32 = vcombine.high %v1048_v26, %v1056_v27  ;;  %p1723_p5 = scmp.ne.s32.totalorder %s2233_s9, %s1722_s22  ;;  %s1728_s8 = scalar_lea.vmem %s1727_s21, 512 }
 0x1e8   : > { %p1729_p9 = scmp.lt.s32.totalorder %s2233_s9, %s1727_s21  ;;  %p1730_p10 = scmp.lt.s32.totalorder %s1728_s8, %s1722_s22 }
 0x1e9   : > { %v1065_v33 = vrot.slane %v1057_v29, %v2077_v48  ;;  %v1072_v34 = vrot.slane %v1058_v30, %v2077_v48  ;;  %v1081_v35 = vrot.slane %v1073_v31, %v2077_v48  ;;  %v1088_v36 = vrot.slane %v1074_v32, %v2077_v48  ;;  %p1724_p8 = pnand %p1723_p5, %p1969_p12 }
 0x1ea   : > { %p1731_p0 = por %p1730_p10, %p1729_p9 }
 0x1eb   : > { %v1089_v37 = vcombine.low %v1065_v33, %v1081_v35  ;;  %v1090_v38 = vcombine.high %v1065_v33, %v1081_v35  ;;  %v1091_v39 = vcombine.low %v1072_v34, %v1088_v36  ;;  %v1092_v41 = vcombine.high %v1072_v34, %v1088_v36  ;;  %p1725_p6 = pneg %p1724_p8 }
 0x1ed   : > { %v1093_v40 = vpack.c.bf16 %v1089_v37, %v1089_v37  ;;  %v1094_v42 = vpack.c.bf16 %v1090_v38, %v1090_v38  ;;  %v1095_v43 = vpack.c.bf16 %v1091_v39, %v1091_v39  ;;  %v1096_v44 = vpack.c.bf16 %v1092_v41, %v1092_v41  ;;  %p1732_p7 = pnand %p1731_p0, %p1725_p6 }
 0x1ef   : > { %1097 = vst.msk [vmem:[%s424_s10] sm:$0xf] %vm648_vm2, %v1093_v40  ;;  %1098 = vst.msk [vmem:[%s424_s10 + $0x4] sm:$0xf] %vm648_vm2, %v1094_v42 }
 0x1f0   : > { %1099 = vst.msk [vmem:[%s424_s10 + $0x8] sm:$0xf] %vm648_vm2, %v1095_v43  ;;  %1100 = vst.msk [vmem:[%s424_s10 + $0xc] sm:$0xf] %vm648_vm2, %v1096_v44 }
 0x1f1   : > { %1735 = shalt.err (!%p1732_p7)
}
 0x1f2   : > { %s1736_s1 = scalar_lea.hbm %s2231_s12, 256  ;;  %s1740_s20 = scalar_lea.hbm %s2295_s7, 512 }
 0x1f3   : > { %p1737_p2 = scmp.ne.s32.totalorder %s2231_s12, %s1736_s1  ;;  %p1741_p1 = scmp.lt.s32.totalorder %s2231_s12, %s2295_s7 }
 0x1f4   : > { %p1742_p4 = scmp.lt.s32.totalorder %s1740_s20, %s1736_s1 }
 0x1f5   : > { %p1738_p11 = pnand %p1737_p2, %p1969_p12 }
 0x1f6   : > { %p1743_p5 = por %p1742_p4, %p1741_p1 }
 0x1f7   : > { %p1739_p3 = pneg %p1738_p11 }
 0x1f9   : > { %p1744_p8 = pnand %p1743_p5, %p1739_p3 }
 0x1fb   : > { %1747 = shalt.err (!%p1744_p8)
}
 0x1fc   : > { %1462 = dma.vmem_to_hbm [thread:$0]  (%p1969_p12), %s2233_s9, 256, %s2231_s12, %s2142_s17, %s1830_s11, %s1830_s11, %s1831_s27  }
 0x1fd PF: > { %s2326_s24 = sld [smem:[#allocation19_spill]] }
 0x1fe   : > { %s2328_s16 = sld [smem:[#allocation21_spill]] }
 0x203   : > { %s1175_s10 = sand.u32 1, %s2326_s24  }
 0x204   : > { %p2329_p6 = scmp.ge.s32.totalorder %s2328_s16, 2  ;;  %s1176_s14 = scalar_lea.sflag [#allocation4], %s1175_s10 }
 0x206   : > { %p1481_p9 = pnand %p2329_p6, %p1973_p13 }
 0x208   : > { %p1482_p10 = pneg %p1481_p9 }
 0x20a   : > { %1785 = dma.done.wait (%p1482_p10), %s1176_s14, 256  }
 0x20b   : > { %1787 = vsyncadd (%p1482_p10), %s1176_s14, 4294967040  ;;  %s2330_s18 = sadd.s32 4294967294, %s2328_s16  }
 0x20c   : > { %s1184_s23 = sand.u32 1, %s2330_s18  }
 0x20d   : > { %s1185_s22 = scalar_lea.sflag [#allocation12], %s1184_s23 }
 0x20e   : > { %1789 = dma.done.wait (%p1482_p10), %s1185_s22, 512  }
 0x20f   : > { %1791 = vsyncadd (%p1482_p10), %s1185_s22, 4294966784  ;;  %s31_s29 = sadd.s32 1, %s2328_s16   ;;  %s2331_s17 = sld [smem:[#allocation23_spill]] }
 0x210   : > { %p28_p12 = scmp.ge.s32.totalorder %s31_s29, 4   ;;  %s2332_s27 = sld [smem:[#allocation20_spill]] }
 0x211   : > { %s2333_s28 = sld [smem:[#allocation22_spill]]  ;;  %s2334_s24 = smov %s1798_s25 }
 0x212   : > { %s2335_s25 = smov %s1802_s26  ;;  %30 = sbr.rel (!%p28_p12) target bundleno = 13 (0xd), region = 149 }
 0x215   : > { %s2336_s26 = smov %s2331_s17 }
 0x217   :  { %1199 = vsyncpa [#allocation3], 1 }
 0x218   :  { %1201 = vsyncpa [#allocation3 + $0x1], 1 }
 0x219   :  { %1202 = vsyncpa [#allocation6], 1 }
 0x21a   :  { %1204 = vsyncpa [#allocation6 + $0x1], 1 }
 0x21b   :  { %1205 = vsyncpa [#allocation9], 1 }
 0x21c   :  { %1206 = vsyncpa [#allocation4], 1 }
 0x21d   :  { %1208 = vsyncpa [#allocation4 + $0x1], 1 }
 0x21e   :  { %1209 = vsyncpa [#allocation12], 1 }
 0x21f   :  { %1211 = vsyncpa [#allocation12 + $0x1], 1 }

</bundles_post_ra>
